<compile_context>
chip_gen: v6e
topology: v6e:2x2x1
jax: 0.10.0
libtpu: 0.0.40
codegen_flags: <defaults>
</compile_context>

<pallas_src>
import functools

import jax
import jax.numpy as jnp
from jax.experimental import pallas as pl
from jax.experimental.pallas import tpu as pltpu

_TARGET_BLOCK_BYTES = 3 << 20          # ~3 MiB per block (x4 double-buffered ~12 MiB)
_VMEM_LIMIT_BYTES = 32 * 1024 * 1024   # fits v5e/v6e/v7x scoped-VMEM budgets


def _activation_complex_kernel(x_ref, o_ref, *, inv_c, eps):
    """Elementwise complex activation on one (TILE_B, 2, TILE_R, LANE) block."""
    xr = x_ref[:, 0]                       # (TILE_B, TILE_R, LANE)
    xi = x_ref[:, 1]

    # norm in f32 (accurate for bf16 inputs, no-op for f32).
    xr_f = xr.astype(jnp.float32)
    xi_f = xi.astype(jnp.float32)
    norm = jnp.sqrt(xr_f * xr_f + xi_f * xi_f + eps)

    # scale = norm / max(norm, c) == min(norm / c, 1)   (norm > 0, c > 0)
    scale = jnp.minimum(norm * inv_c, 1.0)

    # Apply scale in f32, single cast at the store.
    o_ref[:, 0] = (xr_f * scale).astype(o_ref.dtype)
    o_ref[:, 1] = (xi_f * scale).astype(o_ref.dtype)


def _launch(x4, c):
    """Run the kernel on x4 of shape (b, 2, r, lane)."""
    b, two, r, lane = x4.shape
    assert two == 2
    dsize = jnp.dtype(x4.dtype).itemsize
    sub = max(8, 32 // dsize)              # sublane packing: f32->8, bf16->16, int8->32

    bytes_per_row = 2 * lane * dsize       # one R-row (real + imag) of one batch item
    max_tile_r = max(1, _TARGET_BLOCK_BYTES // bytes_per_row)

    if r <= max_tile_r:
        tile_r = r                         # full dim -> always a legal block dim
        # Grow the block over the batch axis so small per-image shapes still get
        # ~_TARGET_BLOCK_BYTES blocks (amortizes the ~0.35 us per-grid-step cost).
        tile_b = min(b, max(1, _TARGET_BLOCK_BYTES // (r * bytes_per_row)))
        while b % tile_b != 0:             # prefer a divisor -> no ragged batch edge
            tile_b -= 1
    else:
        tile_b = 1
        tile_r = max(sub, (max_tile_r // sub) * sub)   # dtype-aware (sub, 128) align

    # Keep >= 2 grid steps when possible so both v7x TensorCores get work
    # (harmless on single-TC v5e/v6e: blocks stay well above 1 MiB).
    if pl.cdiv(b, tile_b) * pl.cdiv(r, tile_r) < 2:
        if tile_b > 1:
            tile_b = (tile_b + 1) // 2
        elif tile_r > sub:
            tile_r = max(sub, ((tile_r // 2) // sub) * sub)

    grid = (pl.cdiv(b, tile_b), pl.cdiv(r, tile_r))
    block = (tile_b, 2, tile_r, lane)
    idx_map = lambda bi, ri: (bi, 0, ri, 0)

    total_elems = b * 2 * r * lane
    kernel = functools.partial(_activation_complex_kernel,
                               inv_c=1.0 / float(c), eps=1e-5)

    return pl.pallas_call(
        kernel,
        out_shape=jax.ShapeDtypeStruct(x4.shape, x4.dtype),
        grid=grid,
        in_specs=[pl.BlockSpec(block, idx_map)],
        out_specs=pl.BlockSpec(block, idx_map),
        compiler_params=pltpu.CompilerParams(
            dimension_semantics=("parallel", "parallel"),
            vmem_limit_bytes=_VMEM_LIMIT_BYTES),
        cost_estimate=pl.CostEstimate(
            flops=4 * total_elems,                  # ~8 VPU ops per complex element
            transcendentals=total_elems // 2,       # one sqrt per complex element
            bytes_accessed=2 * total_elems * dsize  # read + write the whole tensor
        ),
    )(x4)


def activation_complex(x, c=1.0):
    """JAX/Pallas equivalent of ActivationComplex.forward.

    x: [b, 2, ch, h, w] float array.  Returns an array of the same shape/dtype.
    """
    b, two, ch, h, w = x.shape
    assert two == 2
    assert c > 0

    m = ch * h * w                         # elements per part per batch item
    dsize = jnp.dtype(x.dtype).itemsize
    x_flat = x.reshape(b, 2, m)            # free reshape (contiguous layout)

    if m % 128 == 0:
        # Common case: lane-dense last dim, single HBM round trip.
        lane = next(l for l in (1024, 512, 256, 128) if m % l == 0)
        out4 = _launch(x_flat.reshape(b, 2, m // lane, lane), c)
        return out4.reshape(b, 2, ch, h, w)

    if 2 * m * dsize <= (4 << 20):
        # Ragged m: full-extent last block dim (legal for any size); masked edge
        # stores, but no pad/slice extra HBM passes.
        out4 = _launch(x_flat.reshape(b, 2, 1, m), c)
        return out4.reshape(b, 2, ch, h, w)

    # Rare fallback: ragged AND too large for a single full-extent row block.
    # TODO(synk): handle huge ragged m without the extra pad/slice HBM passes.
    lane = 128
    m_pad = ((m + lane - 1) // lane) * lane
    x_pad = jnp.pad(x_flat, ((0, 0), (0, 0), (0, m_pad - m)))
    out4 = _launch(x_pad.reshape(b, 2, m_pad // lane, lane), c)
    return out4.reshape(b, 2, m_pad)[:, :, :m].reshape(b, 2, ch, h, w)


def _reference(x, c=1.0):
    """Pure-JAX reference mirroring the PyTorch module (math in f32)."""
    xr = x[:, 0].astype(jnp.float32)
    xi = x[:, 1].astype(jnp.float32)
    norm = jnp.sqrt(xr * xr + xi * xi + 1e-5)[:, None]       # [b,1,ch,h,w]
    scale = norm / jnp.maximum(norm, jnp.float32(c))
    return (x.astype(jnp.float32) * scale).astype(x.dtype)


if __name__ == "__main__":
    # Primary shape from the module spec: [b, 2, ch, h, w].
    x = jax.random.normal(jax.random.PRNGKey(0), (2, 2, 4, 16, 16), dtype=jnp.float32)
    y = jax.block_until_ready(activation_complex(x, c=1.0))
    assert y.shape == x.shape and y.dtype == x.dtype
    assert jnp.allclose(y, _reference(x, 1.0), atol=1e-5, rtol=1e-5)

    # Ragged ch*h*w (not a multiple of 128) -> full-extent last-dim path.
    x2 = jax.random.normal(jax.random.PRNGKey(1), (2, 2, 3, 7, 5), dtype=jnp.float32)
    y2 = jax.block_until_ready(activation_complex(x2, c=0.5))
    assert jnp.allclose(y2, _reference(x2, 0.5), atol=1e-5, rtol=1e-5)

    # bf16 path (dtype-aware alignment; f32 math inside the kernel).
    x3 = jax.random.normal(jax.random.PRNGKey(2), (4, 2, 8, 16, 16), dtype=jnp.bfloat16)
    y3 = jax.block_until_ready(activation_complex(x3, c=1.0))
    assert jnp.allclose(y3.astype(jnp.float32),
                        _reference(x3, 1.0).astype(jnp.float32),
                        atol=2e-2, rtol=2e-2)

    print("KERNEL_OK")
</pallas_src>

<mosaic_0001>
module attributes {stable_mosaic.version = 11 : i64} {
  func.func @_activation_complex_kernel(%arg0: i32, %arg1: i32, %arg2: memref<1x2x1x1024xf32, #tpu.memory_space<vmem>>, %arg3: memref<1x2x1x1024xf32, #tpu.memory_space<vmem>>) attributes {dimension_semantics = [#tpu.dimension_semantics<parallel>, #tpu.dimension_semantics<parallel>], iteration_bounds = array<i64: 2, 1>, scalar_prefetch = 0 : i64, scratch_operands = 0 : i64, tpu.core_type = #tpu.core_type<tc>, window_params = [{transform_indices = @transform_0, window_bounds = array<i64: 1, 2, 1, 1024>}, {transform_indices = @transform_1, window_bounds = array<i64: 1, 2, 1, 1024>}]} {
    %c0 = arith.constant 0 : index
    %c0_0 = arith.constant 0 : index
    %c0_1 = arith.constant 0 : index
    %c0_2 = arith.constant 0 : index
    %0 = vector.load %arg2[%c0, %c0_0, %c0_1, %c0_2] : memref<1x2x1x1024xf32, #tpu.memory_space<vmem>>, vector<1x1x1x1024xf32>
    %1 = vector.shape_cast %0 : vector<1x1x1x1024xf32> to vector<1x1x1024xf32>
    %c0_3 = arith.constant 0 : index
    %c1 = arith.constant 1 : index
    %c0_4 = arith.constant 0 : index
    %c0_5 = arith.constant 0 : index
    %2 = vector.load %arg2[%c0_3, %c1, %c0_4, %c0_5] : memref<1x2x1x1024xf32, #tpu.memory_space<vmem>>, vector<1x1x1x1024xf32>
    %3 = vector.shape_cast %2 : vector<1x1x1x1024xf32> to vector<1x1x1024xf32>
    %4 = arith.mulf %1, %1 : vector<1x1x1024xf32>
    %5 = arith.mulf %3, %3 : vector<1x1x1024xf32>
    %6 = arith.addf %4, %5 : vector<1x1x1024xf32>
    %cst = arith.constant 9.99999974E-6 : f32
    %7 = vector.broadcast %cst : f32 to vector<1x1x1024xf32>
    %8 = arith.addf %6, %7 : vector<1x1x1024xf32>
    %9 = math.sqrt %8 : vector<1x1x1024xf32>
    %cst_6 = arith.constant 1.000000e+00 : f32
    %10 = vector.broadcast %cst_6 : f32 to vector<1x1x1024xf32>
    %11 = arith.mulf %9, %10 : vector<1x1x1024xf32>
    %cst_7 = arith.constant 1.000000e+00 : f32
    %12 = vector.broadcast %cst_7 : f32 to vector<1x1x1024xf32>
    %13 = arith.minimumf %11, %12 : vector<1x1x1024xf32>
    %14 = arith.mulf %1, %13 : vector<1x1x1024xf32>
    %c0_8 = arith.constant 0 : index
    %c0_9 = arith.constant 0 : index
    %c0_10 = arith.constant 0 : index
    %c0_11 = arith.constant 0 : index
    %15 = vector.load %arg3[%c0_8, %c0_9, %c0_10, %c0_11] : memref<1x2x1x1024xf32, #tpu.memory_space<vmem>>, vector<1x1x1x1024xf32>
    %16 = vector.shape_cast %15 : vector<1x1x1x1024xf32> to vector<1x1x1024xf32>
    %17 = vector.shape_cast %14 : vector<1x1x1024xf32> to vector<1x1x1x1024xf32>
    tpu.vector_store %arg3[%c0_8, %c0_9, %c0_10, %c0_11], %17 {strides = array<i32>} : memref<1x2x1x1024xf32, #tpu.memory_space<vmem>>, vector<1x1x1x1024xf32>,
    %18 = arith.mulf %3, %13 : vector<1x1x1024xf32>
    %c0_12 = arith.constant 0 : index
    %c1_13 = arith.constant 1 : index
    %c0_14 = arith.constant 0 : index
    %c0_15 = arith.constant 0 : index
    %19 = vector.load %arg3[%c0_12, %c1_13, %c0_14, %c0_15] : memref<1x2x1x1024xf32, #tpu.memory_space<vmem>>, vector<1x1x1x1024xf32>
    %20 = vector.shape_cast %19 : vector<1x1x1x1024xf32> to vector<1x1x1024xf32>
    %21 = vector.shape_cast %18 : vector<1x1x1024xf32> to vector<1x1x1x1024xf32>
    tpu.vector_store %arg3[%c0_12, %c1_13, %c0_14, %c0_15], %21 {strides = array<i32>} : memref<1x2x1x1024xf32, #tpu.memory_space<vmem>>, vector<1x1x1x1024xf32>,
    return
  }
  func.func @transform_0(%arg0: i32, %arg1: i32) -> (i32, i32, i32, i32) {
    %c0_i32 = arith.constant 0 : i32
    %c0_i32_0 = arith.constant 0 : i32
    %c0_i32_1 = arith.constant 0 : i32
    return %arg0, %c0_i32, %arg1, %c0_i32_0 : i32, i32, i32, i32
  }
  func.func @transform_1(%arg0: i32, %arg1: i32) -> (i32, i32, i32, i32) {
    %c0_i32 = arith.constant 0 : i32
    %c0_i32_0 = arith.constant 0 : i32
    %c0_i32_1 = arith.constant 0 : i32
    return %arg0, %c0_i32, %arg1, %c0_i32_0 : i32, i32, i32, i32
  }
}

</mosaic_0001>

<bundles_post_ra>
// kernel: tpu_custom_call.1
= control target key start
LH: loop header
LB: loop body
LE: loop exit
PB: predicated region body
PF: predicated region fallthrough
CT: control target
= control target key end

     0   :  { %6 = vsyncpa [#allocation3], 0  ;;  %s635_s0 = inlined_call_operand.hbm [shape: f32[2,2,1,1024], index: 0, kind: input, shape index: {}]   ;;  %s636_s1 = inlined_call_operand.hbm [shape: f32[2,2,1,1024], index: 1, kind: output, shape index: {}]  }
   0x1   :  { %8 = vsyncpa [#allocation3 + $0x1], 0 }
   0x2   :  { %9 = vsyncpa [#allocation4], 0 }
   0x3   :  { %11 = vsyncpa [#allocation4 + $0x1], 0  ;;  %s489_s6 = smov 0   ;;  %s491_s7 = smov 0  }
   0x4   :  { %s493_s8 = smov 0   ;;  %s495_s9 = smov 0  }
   0x5   :  { %s497_s10 = smov 0   ;;  %s499_s11 = smov 0  }
   0x6 LB: > { %s276_s12 = sadd.s32 4294967295, %s471_s11   ;;  %s277_s13 = sadd.s32 4294967294, %s471_s11   ;;  %s471_s11 = sphi %s499_s11, %s17_s11   ;;  %s467_s10 = sphi %s497_s10, %s647_s10   ;;  %s463_s9 = sphi %s495_s9, %s646_s9   ;;  %s459_s8 = sphi %s493_s8, %s645_s8   ;;  %s455_s7 = sphi %s491_s7, %s644_s7   ;;  %s451_s6 = sphi %s489_s6, %s643_s6  }
   0x7   : > { %s29_s14 = sadd.s32 1, %s467_s10  ;;  %s38_s15 = sadd.s32 1, %s459_s8 }
   0x8   : > { %p31_p0 = scmp.ge.s32.totalorder %s29_s14, 2  ;;  %p45_p1 = scmp.ne.s32.totalorder %s459_s8, %s455_s7 }
   0x9   : > { %p46_p2 = scmp.eq.s32.totalorder %s471_s11, 0  ;;  %p51_p3 = scmp.ne.s32.totalorder %s455_s7, %s451_s6 }
   0xa   : > { %s649_s14 = smov (%p31_p0, %s29_s14), 0  ;;  %p52_p5 = scmp.eq.s32.totalorder %s276_s12, 0 }
   0xb   : > { %p530_p4 = por %p46_p2, %p45_p1  ;;  %s33_s17 = ssub.s32 %s467_s10, %s649_s14 }
   0xc   : > { %p77_p6 = scmp.eq.s32.totalorder %s276_s12, 1  ;;  %p36_p7 = scmp.eq.s32.totalorder %s33_s17, 0 }
   0xd   : > { %p536_p8 = por %p52_p5, %p51_p3  ;;  %p83_p10 = scmp.eq.s32.totalorder %s277_s13, 1 }
   0xe   : > { %p540_p9 = por %p77_p6, %p45_p1  ;;  %p307_p13 = scmp.lt.s32.totalorder %s471_s11, 2 }
   0xf   : > { %s545_s20 = scalar_select %p36_p7, %s459_s8, %s38_s15  }
  0x10   : > { %p547_p11 = por %p83_p10, %p51_p3  ;;  %s103_s22 = sand.u32 1, %s459_s8  }
  0x11   : > { %s280_s23 = sshll.u32 %s103_s22, 4  ;;  %s293_s24 = sshll.u32 %s467_s10, 8 }
  0x12   : > { %s115_s27 = scalar_lea.hbm %s635_s0, %s293_s24  ;;  %s107_s28 = scalar_lea.vmem [#allocation2], %s280_s23 }
  0x13   : > { %s116_s29 = sshll.u32 %s107_s28, 4  ;;  %p560_p0 = pnand %p307_p13, %p530_p4  ;;  %s117_s29 = int_to_ptr.vmem [resolvable:$true] %s116_s29 }
  0x14   : > { %p283_p1 = scmp.ge.s32.totalorder %s471_s11, 1  ;;  %s104_s2 = scalar_lea.sflag [#allocation3], %s103_s22 }
  0x15   : > { %p365_p2 = pneg %p560_p0  ;;  %s376_s3 = scalar_lea.vmem %s117_s29, 256 }
  0x16   : > { %p377_p3 = scmp.ne.s32.totalorder %s117_s29, %s376_s3  ;;  %s473_s4 = smov [#allocation2]  }
  0x17   : > { %s381_s5 = sshll.u32 %s473_s4, 4  ;;  %s382_s5 = int_to_ptr.vmem [resolvable:$false] %s381_s5 }
  0x18   : > { %p379_p5 = pnand %p377_p3, %p365_p2  ;;  %s383_s12 = scalar_lea.vmem %s382_s5, 512 }
  0x19   : > { %p384_p7 = scmp.lt.s32.totalorder %s117_s29, %s382_s5  ;;  %p385_p10 = scmp.lt.s32.totalorder %s383_s12, %s376_s3 }
  0x1a   : > { %p380_p6 = pneg %p379_p5 }
  0x1b   : > { %p386_p12 = por %p385_p10, %p384_p7 }
  0x1d   : > { %p387_p4 = pnand %p386_p12, %p380_p6 }
  0x1f   : > { %390 = shalt.err (!%p387_p4)
}
  0x20   : > { %s474_s13 = smov 128   ;;  %s475_s15 = smov 8  }
  0x21   : > { %302 = dma.hbm_to_vmem [thread:$0]  (!%p560_p0), %s115_s27, 256, %s117_s29, %s104_s2, %s474_s13, %s474_s13, %s475_s15  }
  0x22   : > { %p124_p13 = scmp.lt.s32.totalorder %s471_s11, 3 }
  0x24   : > { %p125_p2 = pnand %p283_p1, %p124_p13 }
  0x25   : > { %s573_s16 = sand.u32 (!%p125_p2), 1, %s455_s7  }
  0x26   : > { %128 = sbr.rel (%p125_p2) target bundleno = 87 (0x57), region = 24  ;;  %s284_s17 = sshll.u32 (!%p125_p2), %s573_s16, 4 }
  0x27   : > { %s131_s22 = scalar_lea.sflag (!%p125_p2), [#allocation3], %s573_s16  ;;  %s134_s23 = scalar_lea.vmem (!%p125_p2), [#allocation2], %s284_s17 }
  0x2b   : > { %442 = dma.done.wait (%p536_p8), %s131_s22, 256  }
  0x2c   : > { %444 = vsyncadd (%p536_p8), %s131_s22, 4294967040  ;;  %v153_v0 = vld [vmem:[%s134_s23] sm:$0xff]  ;;  %v286_v1 = vld [vmem:[%s134_s23 + $0x8] sm:$0xff]  ;;  %s152_s24 = scalar_lea.vmem [#allocation5], %s284_s17  ;;  %s294_s18 = sshll.u32 %s463_s9, 8 }
  0x2d   : > { %v156_v2 = vmul.f32 %v153_v0, %v153_v0  ;;  %v157_v3 = vmul.f32 %v286_v1, %v286_v1  ;;  %s189_s25 = sshll.u32 %s152_s24, 4  ;;  %s587_s28 = scalar_lea.hbm %s636_s1, %s294_s18  ;;  %s582_s25 = int_to_ptr.vmem [resolvable:$true] %s189_s25 }
  0x2e   : > { %s174_s29 = scalar_lea.sflag [#allocation4], %s573_s16  ;;  %s391_s30 = scalar_lea.vmem %s582_s25, 256 }
  0x2f   : > { %v158_v4 = vadd.f32 %v157_v3, %v156_v2  ;;  %p392_p8 = scmp.ne.s32.totalorder %s582_s25, %s391_s30  ;;  %s476_s9 = smov [#allocation5]  }
  0x30   : > { %s395_s2 = sshll.u32 %s476_s9, 4  ;;  %s396_s2 = int_to_ptr.vmem [resolvable:$false] %s395_s2 }
  0x31   : > { %v159_v5 = vadd.f32 1e-05, %v158_v4  ;;  %p393_p12 = pnand %p392_p8, %p540_p9  ;;  %s397_s3 = scalar_lea.vmem %s396_s2, 512 }
  0x32   : > { %p398_p1 = scmp.lt.s32.totalorder %s582_s25, %s396_s2  ;;  %p399_p3 = scmp.lt.s32.totalorder %s397_s3, %s391_s30 }
  0x33   : > { %361 = vrsqrt.f32 %v159_v5  ;;  %vm162_vm0 = vcmp.eq.f32.partialorder %v159_v5, inf  ;;  %v165_v7 = vand.u32 2147483648, %v159_v5  ;;  %vm164_vm1 = vcmp.eq.f32.partialorder %v159_v5, 0.0  ;;  %p394_p0 = pneg %p393_p12 }
  0x34   : > { %p400_p5 = por %p399_p3, %p398_p1 }
  0x36   : > { %p401_p6 = pnand %p400_p5, %p394_p0 }
  0x40   : > { %v362_v6 = vpop.eup %361 }
  0x41   : > { %v161_v8 = vmul.f32 %v362_v6, %v159_v5 }
  0x43   : > { %v163_v9 = vsel %vm162_vm0, %v159_v5, %v161_v8 }
  0x44   : > { %v166_v10 = vsel %vm164_vm1, %v165_v7, %v163_v9 }
  0x45   : > { %v167_v11 = vmin.f32 %v166_v10, 1.0 }
  0x47   : > { %v168_v12 = vmul.f32 %v167_v11, %v153_v0  ;;  %v170_v13 = vmul.f32 %v286_v1, %v167_v11 }
  0x49   : > { %169 = vst [vmem:[%s152_s24] sm:$0xff] %v168_v12  ;;  %287 = vst [vmem:[%s152_s24 + $0x8] sm:$0xff] %v170_v13 }
  0x4a   : > { %404 = shalt.err (!%p401_p6)
}
  0x4b   : > { %s405_s4 = scalar_lea.hbm %s587_s28, 256  ;;  %s409_s13 = scalar_lea.hbm %s636_s1, 512 }
  0x4c   : > { %p406_p7 = scmp.ne.s32.totalorder %s587_s28, %s405_s4  ;;  %p410_p13 = scmp.lt.s32.totalorder %s587_s28, %s636_s1 }
  0x4d   : > { %p411_p2 = scmp.lt.s32.totalorder %s409_s13, %s405_s4 }
  0x4e   : > { %p407_p10 = pnand %p406_p7, %p540_p9 }
  0x4f   : > { %p412_p8 = por %p411_p2, %p410_p13 }
  0x50   : > { %p408_p4 = pneg %p407_p10 }
  0x52   : > { %p413_p12 = pnand %p412_p8, %p408_p4 }
  0x54   : > { %416 = shalt.err (!%p413_p12)
}
  0x55   : > { %s477_s22 = smov 128   ;;  %s478_s23 = smov 8  }
  0x56   : > { %297 = dma.vmem_to_hbm [thread:$0]  (%p540_p9), %s582_s25, 256, %s587_s28, %s174_s29, %s477_s22, %s477_s22, %s478_s23  }
  0x57 PF: > { %s204_s24 = sand.u32 1, %s451_s6   ;;  %p642_p0 = scmp.ge.s32.totalorder %s471_s11, 2 }
  0x58   : > { %s205_s18 = scalar_lea.sflag [#allocation4], %s204_s24 }
  0x59   : > { %p304_p1 = pnand %p642_p0, %p547_p11 }
  0x5b   : > { %p305_p3 = pneg %p304_p1 }
  0x5d   : > { %446 = dma.done.wait (%p305_p3), %s205_s18, 256  }
  0x5e   : > { %448 = vsyncadd (%p305_p3), %s205_s18, 4294967040  ;;  %s17_s11 = sadd.s32 1, %s471_s11   ;;  %s643_s6 = smov %s455_s7 }
  0x5f   : > { %p14_p5 = scmp.ge.s32.totalorder %s17_s11, 4   ;;  %s644_s7 = smov %s459_s8 }
  0x60   : > { %s645_s8 = smov %s545_s20  ;;  %s646_s9 = smov %s467_s10 }
  0x61   : > { %s647_s10 = smov %s649_s14  ;;  %16 = sbr.rel (!%p14_p5) target bundleno = 6 (0x6), region = 71 }
  0x66   :  { %210 = vsyncpa [#allocation3], 1 }
  0x67   :  { %212 = vsyncpa [#allocation3 + $0x1], 1 }
  0x68   :  { %213 = vsyncpa [#allocation4], 1 }
  0x69   :  { %215 = vsyncpa [#allocation4 + $0x1], 1 }

</bundles_post_ra>
